<compile_context>
chip_gen: v7x
topology: tpu7x:2x2x1
jax: 0.10.0
libtpu: 0.0.40
codegen_flags: <defaults>
</compile_context>

<pallas_src>
import functools

import jax
import jax.numpy as jnp
from jax.experimental import pallas as pl
from jax.experimental.pallas import tpu as pltpu


# ---------------------------------------------------------------------------
# Hardware-aware sizing helpers
# ---------------------------------------------------------------------------
def _vmem_capacity_bytes():
    try:
        info = pltpu.get_tpu_info()
        cap = getattr(info, "vmem_capacity_bytes", None)
        if cap:
            return int(cap)
    except Exception:
        pass
    return 64 * 1024 * 1024  # conservative default (v7x per-TC VMEM)


def _num_tensorcores():
    try:
        info = pltpu.get_tpu_info()
        for name in ("num_tensorcores", "tensorcores_per_chip", "num_cores",
                     "core_count"):
            v = getattr(info, name, None)
            if isinstance(v, int) and v > 0:
                return v
    except Exception:
        pass
    return 1


def _vmem_limit(need_bytes, cap):
    # ~50% headroom for compiler-internal scratch, clamped to physical VMEM.
    return int(min(cap, max(4 * 1024 * 1024, need_bytes + need_bytes // 2)))


def _pick_hw_tile(hw, c, itemsize, budget, bufs):
    """Largest lane tile dividing hw whose `bufs` blocks fit in `budget`.

    Prefers >=512-lane tiles (measured ~85% vs ~29% of HBM roofline at 512 vs
    128 on v6e); falls back to 128-lane granularity only if nothing larger fits.
    """
    for step in (512, 128):
        best = None
        tile = step
        while tile <= hw:
            if hw % tile == 0 and bufs * c * tile * itemsize <= budget:
                best = tile
            tile += step
        if best is not None:
            return best
    return None


# ---------------------------------------------------------------------------
# Shared in-kernel math
# ---------------------------------------------------------------------------
def _branch_scale(y, fc1_w, fc1_b, se_w, se_b, c):
    """sigmoid(sum_i softmax(fc1(y))[i] * SE_i(y)) from pooled y: (C,1)->(C,1)."""
    # fc_1: Linear(C -> 3), softmax over the 3 branch weights.  Exact divide:
    # it runs once per batch element, so approx reciprocal buys nothing.
    logits = jnp.dot(fc1_w, y, preferred_element_type=jnp.float32) + fc1_b   # (3, 1)
    m = jnp.max(logits, axis=0, keepdims=True)
    e = jnp.exp(logits - m)
    w3 = e / jnp.sum(e, axis=0, keepdims=True)                               # (3, 1)

    # 3 SE layers fused into one (3C, C) @ (C, 1) matvec on the MXU; weights
    # may be bf16 (fed natively), accumulation stays f32.
    se = jnp.dot(se_w, y.astype(se_w.dtype),
                 preferred_element_type=jnp.float32) + se_b                  # (3C, 1)

    # Weighted combine of the three branches (static sublane slices).
    s = (w3[0:1, 0:1] * se[0:c, :]
         + w3[1:2, 0:1] * se[c:2 * c, :]
         + w3[2:3, 0:1] * se[2 * c:3 * c, :])                                # (C, 1)
    return jax.nn.sigmoid(s)


# ---------------------------------------------------------------------------
# Kernels
# ---------------------------------------------------------------------------
def _da_fused_kernel(x_ref, fc1_w_ref, fc1_b_ref, se_w_ref, se_b_ref, o_ref,
                     *, c, hw):
    """Single-pass kernel: one whole (C, HW) block per batch element."""
    x2 = x_ref[0]                                                   # (C, HW), input dtype
    # Global average pool: cross-lane (XLU) reduce with f32 accumulation.
    pooled = jnp.sum(x2, axis=1, keepdims=True, dtype=jnp.float32) * (1.0 / hw)
    scale = _branch_scale(pooled, fc1_w_ref[...], fc1_b_ref[...],
                          se_w_ref[...], se_b_ref[...], c)           # (C, 1) f32
    # Multiply in the input dtype — no f32 upcast of the block.
    o_ref[0] = (x2 * scale.astype(x2.dtype)).astype(o_ref.dtype)


def _da_pool_kernel(x_ref, fc1_w_ref, fc1_b_ref, se_w_ref, se_b_ref,
                    scale_ref, acc_ref, *, c, hw_total):
    """Tiled pass 1: accumulate pooled sum over HW tiles, finalize the scale."""
    t = pl.program_id(1)

    @pl.when(t == 0)
    def _():
        acc_ref[...] = jnp.zeros_like(acc_ref)

    x2 = x_ref[0]                                                   # (C, hw_tile)
    acc_ref[...] += jnp.sum(x2, axis=1, keepdims=True, dtype=jnp.float32)

    @pl.when(t == pl.num_programs(1) - 1)
    def _():
        pooled = acc_ref[...] * (1.0 / hw_total)                    # true-HW mean
        scale_ref[0] = _branch_scale(pooled, fc1_w_ref[...], fc1_b_ref[...],
                                     se_w_ref[...], se_b_ref[...], c)


def _da_apply_kernel(x_ref, scale_ref, o_ref):
    """Tiled pass 2: out = x * per-channel scale (pure streaming, input dtype)."""
    x2 = x_ref[0]
    o_ref[0] = (x2 * scale_ref[0].astype(x2.dtype)).astype(o_ref.dtype)


# ---------------------------------------------------------------------------
# Wrappers
# ---------------------------------------------------------------------------
def _prep_weights(params, c, se_dtype):
    fc1_w = params["fc1_w"].astype(jnp.float32)                    # (3, C)
    fc1_b = params["fc1_b"].astype(jnp.float32).reshape(3, 1)      # (3, 1)
    se_w = params["se_w"].astype(se_dtype).reshape(3 * c, c)       # (3C, C)
    se_b = params["se_b"].astype(jnp.float32).reshape(3 * c, 1)    # (3C, 1)
    return fc1_w, fc1_b, se_w, se_b


def _weight_specs(c):
    """Constant weights: index_map never changes -> single-buffered."""
    const = lambda *idx: (0, 0)
    buf1 = pl.Buffered(1)
    return [
        pl.BlockSpec((3, c), const, pipeline_mode=buf1),
        pl.BlockSpec((3, 1), const, pipeline_mode=buf1),
        pl.BlockSpec((3 * c, c), const, pipeline_mode=buf1),
        pl.BlockSpec((3 * c, 1), const, pipeline_mode=buf1),
    ]


def _da_fused(x3, weights, *, c, hw, cap):
    b = x3.shape[0]
    fc1_w, fc1_b, se_w, se_b = weights
    w_bytes = sum(wt.size * wt.dtype.itemsize for wt in weights)
    limit = _vmem_limit(4 * c * hw * x3.dtype.itemsize + w_bytes, cap)

    return pl.pallas_call(
        functools.partial(_da_fused_kernel, c=c, hw=hw),
        out_shape=jax.ShapeDtypeStruct((b, c, hw), x3.dtype),
        grid_spec=pltpu.PrefetchScalarGridSpec(
            num_scalar_prefetch=0,
            grid=(b,),
            in_specs=[pl.BlockSpec((1, c, hw), lambda i: (i, 0, 0))]
            + _weight_specs(c),
            out_specs=pl.BlockSpec((1, c, hw), lambda i: (i, 0, 0)),
        ),
        input_output_aliases={0: 0},   # donate x's HBM buffer to the output
        compiler_params=pltpu.CompilerParams(
            dimension_semantics=("parallel",),
            vmem_limit_bytes=limit,
        ),
    )(x3, fc1_w, fc1_b, se_w, se_b)


def _da_tiled(x3, weights, *, c, hw, budget, cap):
    b = x3.shape[0]
    itemsize = x3.dtype.itemsize
    fc1_w, fc1_b, se_w, se_b = weights
    w_bytes = sum(wt.size * wt.dtype.itemsize for wt in weights)

    # Pass 1 only double-buffers its input block; pass 2 double-buffers in+out.
    t1 = _pick_hw_tile(hw, c, itemsize, budget - w_bytes, 2)
    t2 = _pick_hw_tile(hw, c, itemsize, budget, 4)
    hw_pad = hw
    if t1 is None or t2 is None or min(t1, t2) < 512:
        # No clean >=512-lane divisor: zero-pad HW to a multiple of 512.
        # Exact — padded zeros add 0 to the pooled sum and we divide by the
        # true HW; padding is sliced off the output.
        hw_pad = ((hw + 511) // 512) * 512
        if hw_pad != hw:
            x3 = jnp.pad(x3, ((0, 0), (0, 0), (0, hw_pad - hw)))
        t1 = _pick_hw_tile(hw_pad, c, itemsize, budget - w_bytes, 2) or min(512, hw_pad)
        t2 = _pick_hw_tile(hw_pad, c, itemsize, budget, 4) or min(512, hw_pad)

    # Pass 1: pooled mean accumulated over HW tiles -> per-channel scale.
    scale = pl.pallas_call(
        functools.partial(_da_pool_kernel, c=c, hw_total=hw),
        out_shape=jax.ShapeDtypeStruct((b, c, 1), jnp.float32),
        grid_spec=pltpu.PrefetchScalarGridSpec(
            num_scalar_prefetch=0,
            grid=(b, hw_pad // t1),
            in_specs=[pl.BlockSpec((1, c, t1), lambda i, j: (i, 0, j))]
            + _weight_specs(c),
            out_specs=pl.BlockSpec((1, c, 1), lambda i, j: (i, 0, 0)),
            scratch_shapes=[pltpu.VMEM((c, 1), jnp.float32)],
        ),
        compiler_params=pltpu.CompilerParams(
            dimension_semantics=("parallel", "arbitrary"),
            vmem_limit_bytes=_vmem_limit(2 * c * t1 * itemsize + w_bytes, cap),
        ),
    )(x3, fc1_w, fc1_b, se_w, se_b)

    # Pass 2: stream x again and apply the scale (fully parallel grid so both
    # TensorCores on v7x share the dominant streaming work).
    out3 = pl.pallas_call(
        _da_apply_kernel,
        out_shape=jax.ShapeDtypeStruct((b, c, hw_pad), x3.dtype),
        grid_spec=pltpu.PrefetchScalarGridSpec(
            num_scalar_prefetch=0,
            grid=(b, hw_pad // t2),
            in_specs=[
                pl.BlockSpec((1, c, t2), lambda i, j: (i, 0, j)),
                pl.BlockSpec((1, c, 1), lambda i, j: (i, 0, 0)),
            ],
            out_specs=pl.BlockSpec((1, c, t2), lambda i, j: (i, 0, j)),
        ),
        input_output_aliases={0: 0},
        compiler_params=pltpu.CompilerParams(
            dimension_semantics=("parallel", "parallel"),
            vmem_limit_bytes=_vmem_limit(4 * c * t2 * itemsize, cap),
        ),
    )(x3, scale)

    if hw_pad != hw:
        out3 = out3[:, :, :hw]
    return out3


def da_forward(x_nchw, params, *, force_tiled=False):
    b, c, h, w = x_nchw.shape
    hw = h * w
    x3 = x_nchw.reshape(b, c, hw)        # free reshape; HW is the lane axis
    itemsize = x3.dtype.itemsize

    cap = _vmem_capacity_bytes()
    budget = (cap * 3) // 4              # ~96 MiB on v5e/v6e, ~48 MiB on v7x

    # The fused (3C, C) SE weight can dominate the budget in f32 at large C;
    # keep it bf16 then (MXU accumulation stays f32 either way).
    se_dtype = jnp.bfloat16 if 3 * c * c * 4 > budget // 6 else jnp.float32
    weights = _prep_weights(params, c, se_dtype)
    w_bytes = sum(wt.size * wt.dtype.itemsize for wt in weights)

    fused_bytes = 4 * c * hw * itemsize + w_bytes
    # Small batch (fewer batch blocks than TensorCores, i.e. v7x B=1): prefer
    # the HW-parallel tiled path so both cores stream HBM.
    small_batch = (b < _num_tensorcores()) and (c * hw * itemsize >= (4 << 20))
    use_tiled = force_tiled or fused_bytes > budget or small_batch

    if use_tiled:
        out3 = _da_tiled(x3, weights, c=c, hw=hw, budget=budget, cap=cap)
    else:
        out3 = _da_fused(x3, weights, c=c, hw=hw, cap=cap)
    return out3.reshape(b, c, h, w)


# ---------------------------------------------------------------------------
# Pure-JAX reference and parameter init (matches the PyTorch module)
# ---------------------------------------------------------------------------
def da_reference(x_nchw, params):
    b, c, _, _ = x_nchw.shape
    y = jnp.mean(x_nchw, axis=(2, 3))                                   # (B, C)
    logits = y @ params["fc1_w"].T + params["fc1_b"]                    # (B, 3)
    w3 = jax.nn.softmax(logits, axis=1)[..., None]                      # (B, 3, 1)
    se_outs = [y @ params["se_w"][i].T + params["se_b"][i] for i in range(3)]
    M = jnp.stack(se_outs, axis=2)                                      # (B, C, 3)
    s = jnp.matmul(M, w3)                                               # (B, C, 1)
    scale = jax.nn.sigmoid(s)[..., None]                                # (B, C, 1, 1)
    return x_nchw * scale


def init_params(key, c):
    k1, k2, k3, k4 = jax.random.split(key, 4)
    bound = 1.0 / jnp.sqrt(jnp.float32(c))
    return {
        "fc1_w": jax.random.uniform(k1, (3, c), jnp.float32, -bound, bound),
        "fc1_b": jax.random.uniform(k2, (3,), jnp.float32, -bound, bound),
        "se_w": jax.random.uniform(k3, (3, c, c), jnp.float32, -bound, bound),
        "se_b": jax.random.uniform(k4, (3, c), jnp.float32, -bound, bound),
    }


if __name__ == "__main__":
    key = jax.random.PRNGKey(0)
    kx, kp = jax.random.split(key)

    B, C, H, W = 2, 4, 16, 16
    x = jax.random.normal(kx, (B, C, H, W), jnp.float32)
    params = init_params(kp, C)

    ref = jax.block_until_ready(da_reference(x, params))

    # jit the wrappers so the input_output_aliases donation hints are handled
    # by XLA's copy insertion (x stays valid for repeated use here).
    fused_fn = jax.jit(da_forward)
    tiled_fn = jax.jit(functools.partial(da_forward, force_tiled=True))

    out_fused = jax.block_until_ready(fused_fn(x, params))   # whole-HW block path
    out_tiled = jax.block_until_ready(tiled_fn(x, params))   # tiled + HW zero-pad path

    assert out_fused.shape == (B, C, H, W)
    assert out_tiled.shape == (B, C, H, W)
    assert jnp.allclose(out_fused, ref, atol=1e-5, rtol=1e-5), "fused path mismatch"
    assert jnp.allclose(out_tiled, ref, atol=1e-5, rtol=1e-5), "tiled path mismatch"
    print("KERNEL_OK")
</pallas_src>

<mosaic_0001>
module attributes {stable_mosaic.version = 11 : i64} {
  func.func @_da_fused_kernel(%arg0: i32, %arg1: memref<1x4x256xf32, #tpu.memory_space<vmem>>, %arg2: memref<3x4xf32, #tpu.memory_space<vmem>>, %arg3: memref<3x1xf32, #tpu.memory_space<vmem>>, %arg4: memref<12x4xf32, #tpu.memory_space<vmem>>, %arg5: memref<12x1xf32, #tpu.memory_space<vmem>>, %arg6: memref<1x4x256xf32, #tpu.memory_space<vmem>>) attributes {dimension_semantics = [#tpu.dimension_semantics<parallel>], iteration_bounds = array<i64: 2>, scalar_prefetch = 0 : i64, scratch_operands = 0 : i64, tpu.core_type = #tpu.core_type<tc>, window_params = [{transform_indices = @transform_0, window_bounds = array<i64: 1, 4, 256>}, {pipeline_mode = #tpu.pipeline_mode<synchronous>, transform_indices = @transform_1, window_bounds = array<i64: 3, 4>}, {pipeline_mode = #tpu.pipeline_mode<synchronous>, transform_indices = @transform_2, window_bounds = array<i64: 3, 1>}, {pipeline_mode = #tpu.pipeline_mode<synchronous>, transform_indices = @transform_3, window_bounds = array<i64: 12, 4>}, {pipeline_mode = #tpu.pipeline_mode<synchronous>, transform_indices = @transform_4, window_bounds = array<i64: 12, 1>}, {transform_indices = @transform_5, window_bounds = array<i64: 1, 4, 256>}]} {
    %c0 = arith.constant 0 : index
    %c0_0 = arith.constant 0 : index
    %c0_1 = arith.constant 0 : index
    %0 = vector.load %arg1[%c0, %c0_0, %c0_1] : memref<1x4x256xf32, #tpu.memory_space<vmem>>, vector<1x4x256xf32>
    %1 = vector.shape_cast %0 : vector<1x4x256xf32> to vector<4x256xf32>
    %cst = arith.constant dense<0.000000e+00> : vector<4xf32>
    %2 = vector.multi_reduction <add>, %1, %cst [1] : vector<4x256xf32> to vector<4xf32>
    %3 = vector.shape_cast %2 : vector<4xf32> to vector<4x1xf32>
    %cst_2 = arith.constant 3.906250e-03 : f32
    %4 = vector.broadcast %cst_2 : f32 to vector<4x1xf32>
    %5 = arith.mulf %3, %4 : vector<4x1xf32>
    %c0_3 = arith.constant 0 : index
    %c0_4 = arith.constant 0 : index
    %6 = vector.load %arg2[%c0_3, %c0_4] : memref<3x4xf32, #tpu.memory_space<vmem>>, vector<3x4xf32>
    %c0_5 = arith.constant 0 : index
    %c0_6 = arith.constant 0 : index
    %7 = vector.load %arg3[%c0_5, %c0_6] : memref<3x1xf32, #tpu.memory_space<vmem>>, vector<3x1xf32>
    %c0_7 = arith.constant 0 : index
    %c0_8 = arith.constant 0 : index
    %8 = vector.load %arg4[%c0_7, %c0_8] : memref<12x4xf32, #tpu.memory_space<vmem>>, vector<12x4xf32>
    %c0_9 = arith.constant 0 : index
    %c0_10 = arith.constant 0 : index
    %9 = vector.load %arg5[%c0_9, %c0_10] : memref<12x1xf32, #tpu.memory_space<vmem>>, vector<12x1xf32>
    %cst_11 = arith.constant dense<0.000000e+00> : vector<3x1xf32>
    %10 = tpu.matmul %6, %5, %cst_11 {dimension_numbers = #tpu.dot_dimension_numbers<[1], [0], [0], [1], [0, 0, 1, 1], [], []>} : vector<3x4xf32>, vector<4x1xf32>, vector<3x1xf32> -> vector<3x1xf32>
    %11 = arith.addf %10, %7 : vector<3x1xf32>
    %cst_12 = arith.constant dense<0xFF800000> : vector<1xf32>
    %12 = vector.multi_reduction <maximumf>, %11, %cst_12 [0] : vector<3x1xf32> to vector<1xf32>
    %13 = vector.shape_cast %12 : vector<1xf32> to vector<1x1xf32>
    %14 = vector.broadcast %13 : vector<1x1xf32> to vector<3x1xf32>
    %15 = arith.subf %11, %14 : vector<3x1xf32>
    %16 = math.exp %15 : vector<3x1xf32>
    %cst_13 = arith.constant dense<0.000000e+00> : vector<1xf32>
    %17 = vector.multi_reduction <add>, %16, %cst_13 [0] : vector<3x1xf32> to vector<1xf32>
    %18 = vector.shape_cast %17 : vector<1xf32> to vector<1x1xf32>
    %19 = vector.broadcast %18 : vector<1x1xf32> to vector<3x1xf32>
    %20 = arith.divf %16, %19 : vector<3x1xf32>
    %cst_14 = arith.constant dense<0.000000e+00> : vector<12x1xf32>
    %21 = tpu.matmul %8, %5, %cst_14 {dimension_numbers = #tpu.dot_dimension_numbers<[1], [0], [0], [1], [0, 0, 1, 1], [], []>} : vector<12x4xf32>, vector<4x1xf32>, vector<12x1xf32> -> vector<12x1xf32>
    %22 = arith.addf %21, %9 : vector<12x1xf32>
    %23 = vector.extract_strided_slice %20 {offsets = [0, 0], sizes = [1, 1], strides = [1, 1]} : vector<3x1xf32> to vector<1x1xf32>
    %24 = vector.extract_strided_slice %22 {offsets = [0, 0], sizes = [4, 1], strides = [1, 1]} : vector<12x1xf32> to vector<4x1xf32>
    %25 = vector.broadcast %23 : vector<1x1xf32> to vector<4x1xf32>
    %26 = arith.mulf %25, %24 : vector<4x1xf32>
    %27 = vector.extract_strided_slice %20 {offsets = [1, 0], sizes = [1, 1], strides = [1, 1]} : vector<3x1xf32> to vector<1x1xf32>
    %28 = vector.extract_strided_slice %22 {offsets = [4, 0], sizes = [4, 1], strides = [1, 1]} : vector<12x1xf32> to vector<4x1xf32>
    %29 = vector.broadcast %27 : vector<1x1xf32> to vector<4x1xf32>
    %30 = arith.mulf %29, %28 : vector<4x1xf32>
    %31 = arith.addf %26, %30 : vector<4x1xf32>
    %32 = vector.extract_strided_slice %20 {offsets = [2, 0], sizes = [1, 1], strides = [1, 1]} : vector<3x1xf32> to vector<1x1xf32>
    %33 = vector.extract_strided_slice %22 {offsets = [8, 0], sizes = [4, 1], strides = [1, 1]} : vector<12x1xf32> to vector<4x1xf32>
    %34 = vector.broadcast %32 : vector<1x1xf32> to vector<4x1xf32>
    %35 = arith.mulf %34, %33 : vector<4x1xf32>
    %36 = arith.addf %31, %35 : vector<4x1xf32>
    %37 = arith.negf %36 : vector<4x1xf32>
    %38 = math.exp %37 : vector<4x1xf32>
    %cst_15 = arith.constant 1.000000e+00 : f32
    %39 = vector.broadcast %cst_15 : f32 to vector<4x1xf32>
    %40 = arith.addf %39, %38 : vector<4x1xf32>
    %41 = arith.divf %39, %40 : vector<4x1xf32>
    %42 = vector.broadcast %41 : vector<4x1xf32> to vector<4x256xf32>
    %43 = arith.mulf %1, %42 : vector<4x256xf32>
    %c0_16 = arith.constant 0 : index
    %c0_17 = arith.constant 0 : index
    %c0_18 = arith.constant 0 : index
    %44 = vector.load %arg6[%c0_16, %c0_17, %c0_18] : memref<1x4x256xf32, #tpu.memory_space<vmem>>, vector<1x4x256xf32>
    %45 = vector.shape_cast %44 : vector<1x4x256xf32> to vector<4x256xf32>
    %46 = vector.shape_cast %43 : vector<4x256xf32> to vector<1x4x256xf32>
    tpu.vector_store %arg6[%c0_16, %c0_17, %c0_18], %46 {strides = array<i32>} : memref<1x4x256xf32, #tpu.memory_space<vmem>>, vector<1x4x256xf32>,
    return
  }
  func.func @transform_0(%arg0: i32) -> (i32, i32, i32) {
    %c0_i32 = arith.constant 0 : i32
    %c0_i32_0 = arith.constant 0 : i32
    %c0_i32_1 = arith.constant 0 : i32
    return %arg0, %c0_i32, %c0_i32_0 : i32, i32, i32
  }
  func.func @transform_1(%arg0: i32) -> (i32, i32) {
    %c0_i32 = arith.constant 0 : i32
    %c0_i32_0 = arith.constant 0 : i32
    %c0_i32_1 = arith.constant 0 : i32
    return %c0_i32, %c0_i32_0 : i32, i32
  }
  func.func @transform_2(%arg0: i32) -> (i32, i32) {
    %c0_i32 = arith.constant 0 : i32
    %c0_i32_0 = arith.constant 0 : i32
    %c0_i32_1 = arith.constant 0 : i32
    return %c0_i32, %c0_i32_0 : i32, i32
  }
  func.func @transform_3(%arg0: i32) -> (i32, i32) {
    %c0_i32 = arith.constant 0 : i32
    %c0_i32_0 = arith.constant 0 : i32
    %c0_i32_1 = arith.constant 0 : i32
    return %c0_i32, %c0_i32_0 : i32, i32
  }
  func.func @transform_4(%arg0: i32) -> (i32, i32) {
    %c0_i32 = arith.constant 0 : i32
    %c0_i32_0 = arith.constant 0 : i32
    %c0_i32_1 = arith.constant 0 : i32
    return %c0_i32, %c0_i32_0 : i32, i32
  }
  func.func @transform_5(%arg0: i32) -> (i32, i32, i32) {
    %c0_i32 = arith.constant 0 : i32
    %c0_i32_0 = arith.constant 0 : i32
    %c0_i32_1 = arith.constant 0 : i32
    return %arg0, %c0_i32, %c0_i32_0 : i32, i32, i32
  }
}

</mosaic_0001>

<bundles_post_ra>
// kernel: da_forward.1
= control target key start
LH: loop header
LB: loop body
LE: loop exit
PB: predicated region body
PF: predicated region fallthrough
CT: control target
= control target key end

     0   :  { %s613_s18 = smov 0   ;;  %s668_s0 = inlined_call_operand.vmem [shape: f32[2,4,256], index: 0, kind: input, shape index: {}, may-alias: {0,5}]   ;;  %s669_s1 = inlined_call_operand.vmem [shape: f32[3,4], index: 1, kind: input, shape index: {}]   ;;  %s670_s2 = inlined_call_operand.vmem [shape: f32[3,1], index: 2, kind: input, shape index: {}]   ;;  %s671_s3 = inlined_call_operand.vmem [shape: f32[12,4], index: 3, kind: input, shape index: {}]   ;;  %s672_s4 = inlined_call_operand.vmem [shape: f32[12,1], index: 4, kind: input, shape index: {}]   ;;  %s673_s5 = inlined_call_operand.vmem [shape: f32[2,4,256], index: 5, kind: output, shape index: {}, may-alias: {0,5}]  }
   0x1 LB: > { %s515_s19 = sadd.s32 4294967295, %s577_s18   ;;  %p519_p0 = scmp.ge.s32.totalorder %s577_s18, 1  ;;  %s577_s18 = sphi %s613_s18, %s15_s18  }
   0x2   : > { %p187_p1 = scmp.lt.s32.totalorder %s577_s18, 3 }
   0x4   : > { %p188_p2 = pnand %p519_p0, %p187_p1 }
   0x5   : > { %p215_p3 = scmp.lt.s32.totalorder (!%p188_p2), %s515_s19, 1  ;;  %vm229_vm0 = vcmask (!%p188_p2), 1043456   ;;  %v579_v5 = vmov (!%p188_p2), 0.0   ;;  %vm580_vm1 = vmmov (!%p188_p2), 0   ;;  %vm242_vm2 = vcmask (!%p188_p2), 31744   ;;  %v238_v6 = vld [vmem:[%s671_s3] sm:$0xff] (!%p188_p2) }
   0x6   : > { %191 = sbr.rel (%p188_p2) target bundleno = 604 (0x25c), region = 40  ;;  %539 = vmatprep.subr.mxu0 (!%p188_p2), %v579_v5  ;;  %541 = vmatprep.mubr.msk.f32.mxu0 (!%p188_p2), %vm580_vm1, %v579_v5  ;;  %v236_v9 = vld [vmem:[%s669_s1] sm:$0x7] (!%p188_p2)  ;;  %v239_v10 = vld [vmem:[%s671_s3 + $0x8] sm:$0xf] (!%p188_p2)  ;;  %v581_v11 = vmov (!%p188_p2), 0   ;;  %v420_v35 = vlaneseq (!%p188_p2) }
   0x7   : > { %546 = vmatprep.mubr.msk.f32.mxu1 (!%p188_p2), %vm242_vm2, %v238_v6  ;;  %561 = vset.pattern.permute.xlu0 (!%p188_p2), %v581_v11  ;;  %v237_v12 = vld [vmem:[%s670_s2] sm:$0x7] (!%p188_p2)  ;;  %vm319_vm3 = vcmask (!%p188_p2), 2048   ;;  %v241_v37 = vld [vmem:[%s672_s4 + $0x8] sm:$0xf] (!%p188_p2) }
   0x8   : > { %v421_v36 = vshrl.u32 (!%p188_p2), %v420_v35, 7  ;;  %v240_v38 = vld [vmem:[%s672_s4] sm:$0xff] (!%p188_p2)  ;;  %v582_v59 = vmov (!%p188_p2), 839922192  }
   0x9   : > { %v451_v60 = vunpack.c.l.s4 (!%p188_p2), %v582_v59 }
   0xa   : > { %v436_v39 = vsub.s32 (!%p188_p2), 2, %v421_v36  ;;  %v422_v40 = vsub.s32 (!%p188_p2), 0, %v421_v36  ;;  %v427_v41 = vsub.s32 (!%p188_p2), 1, %v421_v36 }
   0xb   : > { %v452_v61 = vunpack.c.0.s8 (!%p188_p2), %v451_v60 }
   0xd   : > { %s675_s19 = smov (!%p215_p3, %s515_s19), 1  ;;  %v455_v62 = vsub.s32 %v452_v61, %v421_v36 }
   0xe   : > { %s532_s20 = sshll.u32 %s675_s19, 3 }
   0xf   : > { %s219_s23 = scalar_lea.vmem %s668_s0, %s532_s20  ;;  %s224_s13 = scalar_lea.vmem %s673_s5, %s532_s20 }
  0x10   : > { %v629_v0 = vld [vmem:[%s219_s23] sm:$0xff] }
  0x11   : > { %v227_v1 = vcombine.high %v629_v0, %v629_v0  ;;  %v230_v2 = vsel %vm229_vm0, %v629_v0, 0.0 }
  0x13   : > { %v231_v3 = vsel %vm229_vm0, %v227_v1, 0.0 }
  0x14   : > { %v232_v4 = vadd.f32 %v231_v3, %v230_v2 }
  0x16   : > { %233 = vadd.xlane.f32.xlu0 %v232_v4 }
  0xa3   : > { %v234_v7 = vpop.xlane.xlu0 %233 }
  0xa4   : > { %v235_v8 = vmul.f32 0.00390625, %v234_v7 }
  0xa6   : > { %540 = vmatpush3.msk.msra.mxu0 %vm229_vm0, %v235_v8  ;;  %544 = vmatprep.subr.msk.mxu1 %vm229_vm0, %v235_v8 }
  0xa7   : > { %542 = vmatmul.mubr.msk.f32.vlgmr.msra.gmra.mrb[0].mxu0 %vm242_vm2, %v236_v9  ;;  %545 = vmatpush3.msk.msra.mxu1 %vm229_vm0, %v235_v8 }
  0xa8   : > { %547 = vmatmul.mubr.msk.f32.vlgmr.msra.gmra.mrb[0].mxu1 %vm242_vm2, %v239_v10 }
 0x17a   : > { %v315_v13 = vpop.f32.mrb[0].mxu0 }
 0x17b   : > { %v316_v14 = vadd.f32 %v315_v13, %v237_v12  ;;  %v543_v15 = vpop.f32.mrb[1].mxu0  ;;  %v548_v16 = vpop.f32.mrb[0].mxu1 }
 0x17c   : > { %v411_v17 = vpop.f32.mrb[1].mxu1  ;;  %v417_v44 = vadd.f32 %v548_v16, %v241_v37 }
 0x17d   : > { %v320_v18 = vsel %vm319_vm3, %v316_v14, -inf  ;;  %v412_v45 = vadd.f32 %v411_v17, %v240_v38 }
 0x17e   : > { %v321_v19 = vrot.slane %v320_v18, 4 }
 0x180   : > { %v322_v20 = vmax.f32 %v320_v18, %v321_v19 }
 0x182   : > { %v323_v21 = vrot.slane %v322_v20, 2 }
 0x184   : > { %v324_v22 = vmax.f32 %v322_v20, %v323_v21 }
 0x186   : > { %v325_v23 = vrot.slane %v324_v22, 1 }
 0x188   : > { %v326_v24 = vmax.f32 %v324_v22, %v325_v23 }
 0x18a   : > { %v327_v25 = vsub.f32 %v316_v14, %v326_v24 }
 0x18c   : > { %v328_v26 = vmul.f32 1.442695, %v327_v25 }
 0x18e   : > { %563 = vpow2.f32 %v328_v26 }
 0x198   : > { %v564_v27 = vpop.eup %563 }
 0x199   : > { %v330_v28 = vsel %vm319_vm3, %v564_v27, 0.0 }
 0x19a   : > { %v331_v29 = vrot.slane %v330_v28, 4 }
 0x19c   : > { %v332_v30 = vadd.f32 %v331_v29, %v330_v28 }
 0x19e   : > { %v333_v31 = vrot.slane %v332_v30, 2 }
 0x1a0   : > { %v334_v32 = vadd.f32 %v333_v31, %v332_v30 }
 0x1a2   : > { %v335_v33 = vrot.slane %v334_v32, 1 }
 0x1a4   : > { %v336_v34 = vadd.f32 %v335_v33, %v334_v32 }
 0x1a6   : > { %565 = vrcp.f32 %v336_v34 }
 0x1b0   : > { %v566_v42 = vpop.eup %565 }
 0x1b1   : > { %v338_v43 = vmul.f32 %v566_v42, %v564_v27 }
 0x1b3   : > { %v437_v46 = vrot.slane %v338_v43, %v436_v39  ;;  %v423_v47 = vrot.slane %v338_v43, %v422_v40  ;;  %v428_v48 = vrot.slane %v338_v43, %v427_v41 }
 0x1b5   : > { %v438_v49 = vmul.f32 %v437_v46, %v417_v44  ;;  %v424_v50 = vmul.f32 %v423_v47, %v412_v45  ;;  %v429_v51 = vmul.f32 %v428_v48, %v412_v45 }
 0x1b7   : > { %v431_v52 = vrot.slane %v429_v51, 4 }
 0x1b9   : > { %v433_v53 = vadd.f32 %v431_v52, %v424_v50 }
 0x1bb   : > { %v439_v54 = vadd.f32 %v438_v49, %v433_v53 }
 0x1bd   : > { %v529_v55 = vmul.f32 -1.442695, %v439_v54 }
 0x1bf   : > { %567 = vpow2.f32 %v529_v55 }
 0x1c9   : > { %v568_v56 = vpop.eup %567 }
 0x1ca   : > { %v443_v57 = vadd.f32 1.0, %v568_v56 }
 0x1cc   : > { %569 = vrcp.f32 %v443_v57 }
 0x1d6   : > { %v570_v58 = vpop.eup %569 }
 0x1d7   : > { %448 = vperm.xlu0 %561, %v570_v58  }
 0x256   : > { %v449_v63 = vpop.permute.xlu0 %448 }
 0x257   : > { %v456_v1 = vrot.slane %v449_v63, %v455_v62 }
 0x259   : > { %v458_v2 = vmul.f32 %v456_v1, %v629_v0 }
 0x25b   : > { %459 = vst [vmem:[%s224_s13] sm:$0xff] %v458_v2 }
 0x25c PF: > { %s15_s18 = sadd.s32 1, %s577_s18  }
 0x25d   : > { %p12_p4 = scmp.ge.s32.totalorder %s15_s18, 4  }
 0x25f   :  { %14 = sbr.rel (!%p12_p4) target bundleno = 1 (0x1), region = 70 }

</bundles_post_ra>
